<compile_context>
chip_gen: v7x
topology: tpu7x:2x2x1
jax: 0.10.0
libtpu: 0.0.40
codegen_flags: <defaults>
</compile_context>

<pallas_src>
import functools

import jax
import jax.numpy as jnp
import numpy as np
from jax.experimental import pallas as pl
from jax.experimental.pallas import tpu as pltpu

H1, H2, H3 = 512, 256, 128          # hidden sizes from the PyTorch module
LANE = 128                          # TPU lane width
NEG_INF = -1e30


def _round_up(x, m):
    return ((x + m - 1) // m) * m


def _cdiv(a, b):
    return (a + b - 1) // b


def _elementwise_dtype():
    """bf16 bias-add/ReLU only where the VPU is bf16-native (v6e / v7x);
    older TensorCores (<= v5) keep hidden-layer elementwise math in f32."""
    try:
        kind = jax.devices()[0].device_kind.lower()
    except Exception:
        return jnp.float32
    if any(f"v{v}" in kind for v in (2, 3, 4, 5)):
        return jnp.float32
    return jnp.bfloat16


# ----------------------------------------------------------------------------
# Kernel: full forward pass for one batch tile.
# Output is a lane-dense slab: lanes [0, A) = clamped action probs,
# lane A = critic value, remaining lanes = 0 (sliced off by the wrapper).
# ----------------------------------------------------------------------------
def _actor_critic_kernel(
    x_ref,
    w1_ref, b1_ref,
    w2_ref, b2_ref,
    w3_ref, b3_ref,
    wh_ref, bh_ref,
    mask_ref,
    out_ref,
):
    cdt = w1_ref.dtype          # MXU operand dtype (bf16); accumulation is f32
    edt = b1_ref.dtype          # hidden-layer elementwise dtype (f32 or bf16)

    x = x_ref[...]              # already bf16 from the wrapper

    h = jnp.dot(x, w1_ref[...], preferred_element_type=jnp.float32)
    h = jnp.maximum(h.astype(edt) + b1_ref[...], 0).astype(cdt)
    h = jnp.dot(h, w2_ref[...], preferred_element_type=jnp.float32)
    h = jnp.maximum(h.astype(edt) + b2_ref[...], 0).astype(cdt)
    h = jnp.dot(h, w3_ref[...], preferred_element_type=jnp.float32)
    h = jnp.maximum(h.astype(edt) + b3_ref[...], 0).astype(cdt)

    # Fused actor|critic head: one matmul over the zero-padded (H3, out_w)
    # weights.  Head bias + softmax stay in f32 (precision matters for RL).
    logits = (jnp.dot(h, wh_ref[...], preferred_element_type=jnp.float32)
              + bh_ref[...])

    # Softmax restricted to the actor lanes via a precomputed additive mask
    # row (0 on lanes < A, -1e30 elsewhere): one add instead of iota+cmp+sel.
    mask = mask_ref[...]                               # (1, out_w)
    masked = logits + mask
    m = jnp.max(masked, axis=-1, keepdims=True)
    e = jnp.exp(masked - m)                            # non-actor lanes -> 0
    inv = 1.0 / jnp.sum(e, axis=-1, keepdims=True)     # exact; (tile, 1) only
    probs = jnp.clip(e * inv, 1e-8, 1.0)

    # Non-actor lanes keep the raw logits: lane A = critic value, lanes > A = 0
    # (head weights/bias there are exactly zero — see pack_params).
    out = jnp.where(mask < -1.0, logits, probs)
    out_ref[...] = out.astype(out_ref.dtype)


# ----------------------------------------------------------------------------
# One-time parameter packing (do NOT call per step): fuse actor|critic head,
# cast MXU operands to bf16, build the additive softmax mask.
# ----------------------------------------------------------------------------
def pack_params(params, *, elementwise_dtype=None):
    w1, b1, w2, b2, w3, b3, wa, ba, wc, bc = params
    A = wa.shape[1]
    out_w = max(LANE, _round_up(A + 1, LANE))
    edt = elementwise_dtype or _elementwise_dtype()
    bf = jnp.bfloat16

    pad = out_w - (A + 1)
    # Lanes [0, A) = actor, lane A = critic, lanes > A = exact zeros (required
    # by the slab layout — do not re-initialize these with non-zero values).
    w_head = jnp.concatenate(
        [wa, wc, jnp.zeros((H3, pad), jnp.float32)], axis=1).astype(bf)
    b_head = jnp.concatenate(
        [ba.reshape(1, -1), bc.reshape(1, -1),
         jnp.zeros((1, pad), jnp.float32)], axis=1).astype(jnp.float32)
    lane = jnp.arange(out_w)[None, :]
    mask = jnp.where(lane < A, 0.0, NEG_INF).astype(jnp.float32)

    weights = (
        w1.astype(bf), b1.reshape(1, -1).astype(edt),
        w2.astype(bf), b2.reshape(1, -1).astype(edt),
        w3.astype(bf), b3.reshape(1, -1).astype(edt),
        w_head, b_head, mask,
    )
    return weights, A


# ----------------------------------------------------------------------------
# Forward wrapper: equal-sized batch tiles, >=2 (even) grid steps for v7x.
# ----------------------------------------------------------------------------
@functools.partial(jax.jit, static_argnames=("action_size", "batch_tile"))
def actor_critic_forward(state, weights, *, action_size, batch_tile=1024):
    w1, b1, w2, b2, w3, b3, wh, bh, mask = weights
    B, S = state.shape
    A = action_size
    out_w = wh.shape[1]

    # Equal-sized tiles -> padding capped at <16 rows per tile; even #steps so
    # the "parallel" batch axis shards across both v7x TensorCores (harmless
    # sub-microsecond overhead on single-TC v5e/v6e).
    num_tiles = _cdiv(B, batch_tile)
    if B >= 32:
        if num_tiles == 1:
            num_tiles = 2
        elif num_tiles % 2:
            num_tiles += 1
    tile = _round_up(_cdiv(B, num_tiles), 16)   # 16: bf16 x packs 2 rows/sublane
    Bp = num_tiles * tile

    xp = state if Bp == B else jnp.pad(state, ((0, Bp - B), (0, 0)))
    xp = xp.astype(w1.dtype)                    # bf16 input block: halves x DMA

    flops = 2 * Bp * (S * H1 + H1 * H2 + H2 * H3 + H3 * out_w)
    bytes_accessed = (
        Bp * S * xp.dtype.itemsize
        + sum(a.size * a.dtype.itemsize for a in weights)
        + Bp * out_w * 4)
    cost = pl.CostEstimate(flops=flops, transcendentals=Bp * out_w,
                           bytes_accessed=bytes_accessed)

    bcast = lambda i: (0, 0)   # weights/biases/mask: same block every tile
    out_slab = pl.pallas_call(
        _actor_critic_kernel,
        out_shape=jax.ShapeDtypeStruct((Bp, out_w), jnp.float32),
        grid=(num_tiles,),
        in_specs=[
            pl.BlockSpec((tile, S), lambda i: (i, 0)),          # state tile
            pl.BlockSpec((S, H1), bcast), pl.BlockSpec((1, H1), bcast),
            pl.BlockSpec((H1, H2), bcast), pl.BlockSpec((1, H2), bcast),
            pl.BlockSpec((H2, H3), bcast), pl.BlockSpec((1, H3), bcast),
            pl.BlockSpec((H3, out_w), bcast), pl.BlockSpec((1, out_w), bcast),
            pl.BlockSpec((1, out_w), bcast),                    # softmax mask
        ],
        out_specs=pl.BlockSpec((tile, out_w), lambda i: (i, 0)),
        compiler_params=pltpu.CompilerParams(
            dimension_semantics=("parallel",),      # megacore-shardable
            vmem_limit_bytes=48 * 1024 * 1024,      # covers tile sweeps on v5e
        ),
        cost_estimate=cost,
    )(xp, w1, b1, w2, b2, w3, b3, wh, bh, mask)

    probs = out_slab[:B, :A]
    value = out_slab[:B, A:A + 1]
    return probs, value


# ----------------------------------------------------------------------------
# Deterministic parameter init: orthogonal(gain=sqrt(2)) weights, zero biases
# (mirrors ActorCriticModel._initialize_weights; stored as (in, out)).
# ----------------------------------------------------------------------------
def init_params(key, state_size, action_size):
    ortho = jax.nn.initializers.orthogonal(scale=np.sqrt(2.0))
    shapes = [
        (state_size, H1),
        (H1, H2),
        (H2, H3),
        (H3, action_size),
        (H3, 1),
    ]
    keys = jax.random.split(key, len(shapes))
    params = []
    for k, (fan_in, fan_out) in zip(keys, shapes):
        w = ortho(k, (fan_in, fan_out), jnp.float32)
        b = jnp.zeros((1, fan_out), jnp.float32)
        params.extend([w, b])
    return tuple(params)


# ----------------------------------------------------------------------------
# Pure-JAX reference using the same mixed-precision recipe as the kernel.
# ----------------------------------------------------------------------------
def reference_forward(state, params, *, elementwise_dtype=None):
    w1, b1, w2, b2, w3, b3, wa, ba, wc, bc = params
    bf = jnp.bfloat16
    edt = elementwise_dtype or _elementwise_dtype()
    dot = lambda a, w: jnp.dot(a.astype(bf), w.astype(bf),
                               preferred_element_type=jnp.float32)
    h = state
    for w, b in ((w1, b1), (w2, b2), (w3, b3)):
        h = jnp.maximum(dot(h, w).astype(edt) + b.reshape(1, -1).astype(edt), 0)
    h = h.astype(jnp.float32)
    logits = dot(h, wa) + ba.reshape(1, -1)
    value = dot(h, wc) + bc.reshape(1, -1)
    probs = jnp.clip(jax.nn.softmax(logits, axis=-1), 1e-8, 1.0)
    return probs, value


if __name__ == "__main__":
    state_size = 8
    action_size = 4
    batch = 2

    key = jax.random.PRNGKey(0)
    k_params, k_state = jax.random.split(key)

    params = init_params(k_params, state_size, action_size)
    state = jax.random.normal(k_state, (batch, state_size), jnp.float32)

    weights, A = pack_params(params)                     # one-time packing
    probs, value = actor_critic_forward(state, weights, action_size=A)
    jax.block_until_ready((probs, value))

    ref_probs, ref_value = reference_forward(state, params)
    np.testing.assert_allclose(np.asarray(probs), np.asarray(ref_probs),
                               rtol=2e-3, atol=2e-3)
    np.testing.assert_allclose(np.asarray(value), np.asarray(ref_value),
                               rtol=2e-3, atol=2e-3)
    assert probs.shape == (batch, action_size)
    assert value.shape == (batch, 1)
    assert bool(jnp.all(probs >= 1e-8)) and bool(jnp.all(probs <= 1.0))

    print("KERNEL_OK")
</pallas_src>

<mosaic_0001>
module attributes {stable_mosaic.version = 11 : i64} {
  func.func @_actor_critic_kernel(%arg0: i32, %arg1: memref<16x8xbf16, #tpu.memory_space<vmem>>, %arg2: memref<8x512xbf16, #tpu.memory_space<vmem>>, %arg3: memref<1x512xbf16, #tpu.memory_space<vmem>>, %arg4: memref<512x256xbf16, #tpu.memory_space<vmem>>, %arg5: memref<1x256xbf16, #tpu.memory_space<vmem>>, %arg6: memref<256x128xbf16, #tpu.memory_space<vmem>>, %arg7: memref<1x128xbf16, #tpu.memory_space<vmem>>, %arg8: memref<128x128xbf16, #tpu.memory_space<vmem>>, %arg9: memref<1x128xf32, #tpu.memory_space<vmem>>, %arg10: memref<1x128xf32, #tpu.memory_space<vmem>>, %arg11: memref<16x128xf32, #tpu.memory_space<vmem>>) attributes {dimension_semantics = [#tpu.dimension_semantics<parallel>], iteration_bounds = array<i64: 1>, scalar_prefetch = 0 : i64, scratch_operands = 0 : i64, tpu.core_type = #tpu.core_type<tc>, window_params = [{transform_indices = @transform_0, window_bounds = array<i64: 16, 8>}, {pipeline_mode = #tpu.pipeline_mode<synchronous>, transform_indices = @transform_1, window_bounds = array<i64: 8, 512>}, {pipeline_mode = #tpu.pipeline_mode<synchronous>, transform_indices = @transform_2, window_bounds = array<i64: 1, 512>}, {pipeline_mode = #tpu.pipeline_mode<synchronous>, transform_indices = @transform_3, window_bounds = array<i64: 512, 256>}, {pipeline_mode = #tpu.pipeline_mode<synchronous>, transform_indices = @transform_4, window_bounds = array<i64: 1, 256>}, {pipeline_mode = #tpu.pipeline_mode<synchronous>, transform_indices = @transform_5, window_bounds = array<i64: 256, 128>}, {pipeline_mode = #tpu.pipeline_mode<synchronous>, transform_indices = @transform_6, window_bounds = array<i64: 1, 128>}, {pipeline_mode = #tpu.pipeline_mode<synchronous>, transform_indices = @transform_7, window_bounds = array<i64: 128, 128>}, {pipeline_mode = #tpu.pipeline_mode<synchronous>, transform_indices = @transform_8, window_bounds = array<i64: 1, 128>}, {pipeline_mode = #tpu.pipeline_mode<synchronous>, transform_indices = @transform_9, window_bounds = array<i64: 1, 128>}, {transform_indices = @transform_10, window_bounds = array<i64: 16, 128>}]} {
    %c0 = arith.constant 0 : index
    %c0_0 = arith.constant 0 : index
    %0 = vector.load %arg1[%c0, %c0_0] : memref<16x8xbf16, #tpu.memory_space<vmem>>, vector<16x8xbf16>
    %c0_1 = arith.constant 0 : index
    %c0_2 = arith.constant 0 : index
    %1 = vector.load %arg2[%c0_1, %c0_2] : memref<8x512xbf16, #tpu.memory_space<vmem>>, vector<8x512xbf16>
    %cst = arith.constant dense<0.000000e+00> : vector<16x512xf32>
    %2 = tpu.matmul %0, %1, %cst {dimension_numbers = #tpu.dot_dimension_numbers<[1], [0], [0], [1], [0, 0, 1, 1], [], []>} : vector<16x8xbf16>, vector<8x512xbf16>, vector<16x512xf32> -> vector<16x512xf32>
    %3 = arith.truncf %2 : vector<16x512xf32> to vector<16x512xbf16>
    %c0_3 = arith.constant 0 : index
    %c0_4 = arith.constant 0 : index
    %4 = vector.load %arg3[%c0_3, %c0_4] : memref<1x512xbf16, #tpu.memory_space<vmem>>, vector<1x512xbf16>
    %5 = vector.broadcast %4 : vector<1x512xbf16> to vector<16x512xbf16>
    %6 = arith.addf %3, %5 : vector<16x512xbf16>
    %cst_5 = arith.constant 0.000000e+00 : bf16
    %7 = vector.broadcast %cst_5 : bf16 to vector<16x512xbf16>
    %8 = arith.maximumf %6, %7 : vector<16x512xbf16>
    %c0_6 = arith.constant 0 : index
    %c0_7 = arith.constant 0 : index
    %9 = vector.load %arg4[%c0_6, %c0_7] : memref<512x256xbf16, #tpu.memory_space<vmem>>, vector<512x256xbf16>
    %cst_8 = arith.constant dense<0.000000e+00> : vector<16x256xf32>
    %10 = tpu.matmul %8, %9, %cst_8 {dimension_numbers = #tpu.dot_dimension_numbers<[1], [0], [0], [1], [0, 0, 1, 1], [], []>} : vector<16x512xbf16>, vector<512x256xbf16>, vector<16x256xf32> -> vector<16x256xf32>
    %11 = arith.truncf %10 : vector<16x256xf32> to vector<16x256xbf16>
    %c0_9 = arith.constant 0 : index
    %c0_10 = arith.constant 0 : index
    %12 = vector.load %arg5[%c0_9, %c0_10] : memref<1x256xbf16, #tpu.memory_space<vmem>>, vector<1x256xbf16>
    %13 = vector.broadcast %12 : vector<1x256xbf16> to vector<16x256xbf16>
    %14 = arith.addf %11, %13 : vector<16x256xbf16>
    %cst_11 = arith.constant 0.000000e+00 : bf16
    %15 = vector.broadcast %cst_11 : bf16 to vector<16x256xbf16>
    %16 = arith.maximumf %14, %15 : vector<16x256xbf16>
    %c0_12 = arith.constant 0 : index
    %c0_13 = arith.constant 0 : index
    %17 = vector.load %arg6[%c0_12, %c0_13] : memref<256x128xbf16, #tpu.memory_space<vmem>>, vector<256x128xbf16>
    %cst_14 = arith.constant dense<0.000000e+00> : vector<16x128xf32>
    %18 = tpu.matmul %16, %17, %cst_14 {dimension_numbers = #tpu.dot_dimension_numbers<[1], [0], [0], [1], [0, 0, 1, 1], [], []>} : vector<16x256xbf16>, vector<256x128xbf16>, vector<16x128xf32> -> vector<16x128xf32>
    %19 = arith.truncf %18 : vector<16x128xf32> to vector<16x128xbf16>
    %c0_15 = arith.constant 0 : index
    %c0_16 = arith.constant 0 : index
    %20 = vector.load %arg7[%c0_15, %c0_16] : memref<1x128xbf16, #tpu.memory_space<vmem>>, vector<1x128xbf16>
    %21 = vector.broadcast %20 : vector<1x128xbf16> to vector<16x128xbf16>
    %22 = arith.addf %19, %21 : vector<16x128xbf16>
    %cst_17 = arith.constant 0.000000e+00 : bf16
    %23 = vector.broadcast %cst_17 : bf16 to vector<16x128xbf16>
    %24 = arith.maximumf %22, %23 : vector<16x128xbf16>
    %c0_18 = arith.constant 0 : index
    %c0_19 = arith.constant 0 : index
    %25 = vector.load %arg8[%c0_18, %c0_19] : memref<128x128xbf16, #tpu.memory_space<vmem>>, vector<128x128xbf16>
    %cst_20 = arith.constant dense<0.000000e+00> : vector<16x128xf32>
    %26 = tpu.matmul %24, %25, %cst_20 {dimension_numbers = #tpu.dot_dimension_numbers<[1], [0], [0], [1], [0, 0, 1, 1], [], []>} : vector<16x128xbf16>, vector<128x128xbf16>, vector<16x128xf32> -> vector<16x128xf32>
    %c0_21 = arith.constant 0 : index
    %c0_22 = arith.constant 0 : index
    %27 = vector.load %arg9[%c0_21, %c0_22] : memref<1x128xf32, #tpu.memory_space<vmem>>, vector<1x128xf32>
    %28 = vector.broadcast %27 : vector<1x128xf32> to vector<16x128xf32>
    %29 = arith.addf %26, %28 : vector<16x128xf32>
    %c0_23 = arith.constant 0 : index
    %c0_24 = arith.constant 0 : index
    %30 = vector.load %arg10[%c0_23, %c0_24] : memref<1x128xf32, #tpu.memory_space<vmem>>, vector<1x128xf32>
    %31 = vector.broadcast %30 : vector<1x128xf32> to vector<16x128xf32>
    %32 = arith.addf %29, %31 : vector<16x128xf32>
    %cst_25 = arith.constant dense<0xFF800000> : vector<16xf32>
    %33 = vector.multi_reduction <maximumf>, %32, %cst_25 [1] : vector<16x128xf32> to vector<16xf32>
    %34 = vector.shape_cast %33 : vector<16xf32> to vector<16x1xf32>
    %35 = vector.broadcast %34 : vector<16x1xf32> to vector<16x128xf32>
    %36 = arith.subf %32, %35 : vector<16x128xf32>
    %37 = math.exp %36 : vector<16x128xf32>
    %cst_26 = arith.constant dense<0.000000e+00> : vector<16xf32>
    %38 = vector.multi_reduction <add>, %37, %cst_26 [1] : vector<16x128xf32> to vector<16xf32>
    %39 = vector.shape_cast %38 : vector<16xf32> to vector<16x1xf32>
    %cst_27 = arith.constant 1.000000e+00 : f32
    %40 = vector.broadcast %cst_27 : f32 to vector<16x1xf32>
    %41 = arith.divf %40, %39 : vector<16x1xf32>
    %42 = vector.broadcast %41 : vector<16x1xf32> to vector<16x128xf32>
    %43 = arith.mulf %37, %42 : vector<16x128xf32>
    %cst_28 = arith.constant 9.99999993E-9 : f32
    %cst_29 = arith.constant 1.000000e+00 : f32
    %44 = vector.broadcast %cst_28 : f32 to vector<16x128xf32>
    %45 = arith.maximumf %44, %43 : vector<16x128xf32>
    %46 = vector.broadcast %cst_29 : f32 to vector<16x128xf32>
    %47 = arith.minimumf %46, %45 : vector<16x128xf32>
    %cst_30 = arith.constant -1.000000e+00 : f32
    %48 = vector.broadcast %cst_30 : f32 to vector<1x128xf32>
    %49 = arith.cmpf olt, %30, %48 : vector<1x128xf32>
    %50 = vector.shape_cast %49 : vector<1x128xi1> to vector<1x128xi1>
    %51 = vector.broadcast %50 : vector<1x128xi1> to vector<16x128xi1>
    %52 = arith.select %51, %29, %47 : vector<16x128xi1>, vector<16x128xf32>
    %c0_31 = arith.constant 0 : index
    %c0_32 = arith.constant 0 : index
    %53 = vector.load %arg11[%c0_31, %c0_32] : memref<16x128xf32, #tpu.memory_space<vmem>>, vector<16x128xf32>
    tpu.vector_store %arg11[%c0_31, %c0_32], %52 {strides = array<i32>} : memref<16x128xf32, #tpu.memory_space<vmem>>, vector<16x128xf32>,
    return
  }
  func.func @transform_0(%arg0: i32) -> (i32, i32) {
    %c0_i32 = arith.constant 0 : i32
    %c0_i32_0 = arith.constant 0 : i32
    return %arg0, %c0_i32 : i32, i32
  }
  func.func @transform_1(%arg0: i32) -> (i32, i32) {
    %c0_i32 = arith.constant 0 : i32
    %c0_i32_0 = arith.constant 0 : i32
    %c0_i32_1 = arith.constant 0 : i32
    return %c0_i32, %c0_i32_0 : i32, i32
  }
  func.func @transform_2(%arg0: i32) -> (i32, i32) {
    %c0_i32 = arith.constant 0 : i32
    %c0_i32_0 = arith.constant 0 : i32
    %c0_i32_1 = arith.constant 0 : i32
    return %c0_i32, %c0_i32_0 : i32, i32
  }
  func.func @transform_3(%arg0: i32) -> (i32, i32) {
    %c0_i32 = arith.constant 0 : i32
    %c0_i32_0 = arith.constant 0 : i32
    %c0_i32_1 = arith.constant 0 : i32
    return %c0_i32, %c0_i32_0 : i32, i32
  }
  func.func @transform_4(%arg0: i32) -> (i32, i32) {
    %c0_i32 = arith.constant 0 : i32
    %c0_i32_0 = arith.constant 0 : i32
    %c0_i32_1 = arith.constant 0 : i32
    return %c0_i32, %c0_i32_0 : i32, i32
  }
  func.func @transform_5(%arg0: i32) -> (i32, i32) {
    %c0_i32 = arith.constant 0 : i32
    %c0_i32_0 = arith.constant 0 : i32
    %c0_i32_1 = arith.constant 0 : i32
    return %c0_i32, %c0_i32_0 : i32, i32
  }
  func.func @transform_6(%arg0: i32) -> (i32, i32) {
    %c0_i32 = arith.constant 0 : i32
    %c0_i32_0 = arith.constant 0 : i32
    %c0_i32_1 = arith.constant 0 : i32
    return %c0_i32, %c0_i32_0 : i32, i32
  }
  func.func @transform_7(%arg0: i32) -> (i32, i32) {
    %c0_i32 = arith.constant 0 : i32
    %c0_i32_0 = arith.constant 0 : i32
    %c0_i32_1 = arith.constant 0 : i32
    return %c0_i32, %c0_i32_0 : i32, i32
  }
  func.func @transform_8(%arg0: i32) -> (i32, i32) {
    %c0_i32 = arith.constant 0 : i32
    %c0_i32_0 = arith.constant 0 : i32
    %c0_i32_1 = arith.constant 0 : i32
    return %c0_i32, %c0_i32_0 : i32, i32
  }
  func.func @transform_9(%arg0: i32) -> (i32, i32) {
    %c0_i32 = arith.constant 0 : i32
    %c0_i32_0 = arith.constant 0 : i32
    %c0_i32_1 = arith.constant 0 : i32
    return %c0_i32, %c0_i32_0 : i32, i32
  }
  func.func @transform_10(%arg0: i32) -> (i32, i32) {
    %c0_i32 = arith.constant 0 : i32
    %c0_i32_0 = arith.constant 0 : i32
    return %arg0, %c0_i32 : i32, i32
  }
}

</mosaic_0001>

<bundles_post_ra>
// kernel: actor_critic_forward.1
= control target key start
LH: loop header
LB: loop body
LE: loop exit
PB: predicated region body
PF: predicated region fallthrough
CT: control target
= control target key end

     0   :  { %15 = vsyncpa [#allocation3], 0  ;;  %s1676_s0 = inlined_call_operand.vmem [shape: bf16[16,8], index: 0, kind: input, shape index: {}]   ;;  %s1677_s1 = inlined_call_operand.vmem [shape: bf16[8,512], index: 1, kind: input, shape index: {}]   ;;  %s1678_s2 = inlined_call_operand.vmem [shape: bf16[1,512], index: 2, kind: input, shape index: {}]   ;;  %s1679_s3 = inlined_call_operand.hbm [shape: bf16[512,256], index: 3, kind: input, shape index: {}]   ;;  %s1680_s4 = inlined_call_operand.vmem [shape: bf16[1,256], index: 4, kind: input, shape index: {}]   ;;  %s1681_s5 = inlined_call_operand.hbm [shape: bf16[256,128], index: 5, kind: input, shape index: {}]   ;;  %s1682_s6 = inlined_call_operand.vmem [shape: bf16[1,128], index: 6, kind: input, shape index: {}]   ;;  %s1683_s7 = inlined_call_operand.hbm [shape: bf16[128,128], index: 7, kind: input, shape index: {}]   ;;  %s1684_s8 = inlined_call_operand.vmem [shape: f32[1,128], index: 8, kind: input, shape index: {}]   ;;  %s1685_s9 = inlined_call_operand.vmem [shape: f32[1,128], index: 9, kind: input, shape index: {}]   ;;  %s1686_s10 = inlined_call_operand.vmem [shape: f32[16,128], index: 10, kind: output, shape index: {}]  }
   0x1   :  { %16 = vsyncpa [#allocation5], 0  ;;  %s1490_s13 = smov [#allocation4]   ;;  %s1420_s17 = scalar_lea.hbm %s1681_s5, 2048 }
   0x2   :  { %s42_s14 = sshll.u32 %s1490_s13, 4  ;;  %p1421_p0 = scmp.ne.s32.totalorder %s1681_s5, %s1420_s17  ;;  %s43_s14 = int_to_ptr.vmem [resolvable:$true] %s42_s14 }
   0x3   :  { %p1424_p1 = scmp.lt.u32.totalorder %s1420_s17, %s1681_s5 }
   0x5   :  { %p1426_p2 = pnand %p1424_p1, %p1421_p0 }
   0x7   :  { %1429 = shalt.err (!%p1426_p2)
}
   0x8   :  { %s1430_s22 = scalar_lea.vmem %s43_s14, 2048  ;;  %p1435_p4 = scmp.lt.s32.totalorder %s43_s14, %s43_s14 }
   0x9   :  { %p1431_p3 = scmp.ne.s32.totalorder %s43_s14, %s1430_s22  ;;  %p1436_p5 = scmp.lt.s32.totalorder %s1430_s22, %s1430_s22 }
   0xb   :  { %p1437_p6 = por %p1436_p5, %p1435_p4 }
   0xd   :  { %p1438_p7 = pnand %p1437_p6, %p1431_p3 }
   0xf   :  { %1441 = shalt.err (!%p1438_p7)
}
  0x10   :  { %s1491_s23 = smov 64   ;;  %s1492_s24 = smov 4  }
  0x11   :  { %48 = dma.hbm_to_vmem [thread:$0]  %s1681_s5, 2048, %s43_s14, [#allocation5], %s1491_s23, %s1491_s23, %s1492_s24  }
  0x12   :  { %s1493_s27 = smov [#allocation2]   ;;  %s1442_s11 = scalar_lea.hbm %s1679_s3, 8192 }
  0x13   :  { %s28_s28 = sshll.u32 %s1493_s27, 4  ;;  %p1443_p8 = scmp.ne.s32.totalorder %s1679_s3, %s1442_s11  ;;  %s29_s28 = int_to_ptr.vmem [resolvable:$true] %s28_s28 }
  0x14   :  { %p1446_p9 = scmp.lt.u32.totalorder %s1442_s11, %s1679_s3 }
  0x16   :  { %p1448_p10 = pnand %p1446_p9, %p1443_p8 }
  0x18   :  { %1451 = shalt.err (!%p1448_p10)
}
  0x19   :  { %s1452_s17 = scalar_lea.vmem %s29_s28, 8192  ;;  %p1457_p12 = scmp.lt.s32.totalorder %s29_s28, %s29_s28 }
  0x1a   :  { %p1453_p11 = scmp.ne.s32.totalorder %s29_s28, %s1452_s17  ;;  %p1458_p13 = scmp.lt.s32.totalorder %s1452_s17, %s1452_s17 }
  0x1c   :  { %p1459_p0 = por %p1458_p13, %p1457_p12 }
  0x1e   :  { %p1460_p1 = pnand %p1459_p0, %p1453_p11 }
  0x20   :  { %1463 = shalt.err (!%p1460_p1)
}
  0x21   :  { %s1494_s5 = smov 128   ;;  %s1495_s14 = smov 8  }
  0x22   :  { %34 = dma.hbm_to_vmem [thread:$0]  %s1679_s3, 8192, %s29_s28, [#allocation3], %s1494_s5, %s1494_s5, %s1495_s14  }
  0x23   :  { %s1496_s20 = smov [#allocation6]   ;;  %s1464_s26 = scalar_lea.hbm %s1683_s7, 1024 }
  0x24   :  { %s56_s21 = sshll.u32 %s1496_s20, 4  ;;  %p1465_p2 = scmp.ne.s32.totalorder %s1683_s7, %s1464_s26  ;;  %s57_s21 = int_to_ptr.vmem [resolvable:$true] %s56_s21 }
  0x25   :  { %p1468_p3 = scmp.lt.u32.totalorder %s1464_s26, %s1683_s7 }
  0x27   :  { %p1470_p4 = pnand %p1468_p3, %p1465_p2 }
  0x29   :  { %1473 = shalt.err (!%p1470_p4)
}
  0x2a   :  { %s1474_s12 = scalar_lea.vmem %s57_s21, 1024  ;;  %p1479_p6 = scmp.lt.s32.totalorder %s57_s21, %s57_s21 }
  0x2b   :  { %p1475_p5 = scmp.ne.s32.totalorder %s57_s21, %s1474_s12  ;;  %p1480_p7 = scmp.lt.s32.totalorder %s1474_s12, %s1474_s12 }
  0x2d   :  { %p1481_p8 = por %p1480_p7, %p1479_p6 }
  0x2f   :  { %p1482_p9 = pnand %p1481_p8, %p1475_p5 }
  0x31   :  { %1485 = shalt.err (!%p1482_p9)
}
  0x32   :  { %62 = dma.hbm_to_vmem [thread:$0]  %s1683_s7, 1024, %s57_s21, [#allocation5], %s1491_s23, %s1491_s23, %s1492_s24  }
  0x33   :  { %1486 = dma.done.wait [#allocation3], 8192  }
  0x34   :  { %1487 = vsyncadd [#allocation3], 4294959104 }
  0x35   :  { %1488 = dma.done.wait [#allocation5], 3072  }
  0x36   :  { %1489 = vsyncadd [#allocation5], 4294964224  ;;  %v1497_v0 = vmov 0   ;;  %v79_v1 = vld [vmem:[%s1677_s1] sm:$0xff]  ;;  %vm100_vm0 = vcmask 1043456   ;;  %v80_v5 = vld [vmem:[%s1677_s1 + $0x8] sm:$0xff]  ;;  %v216_v56 = vlaneseq }
  0x37   :  { %145 = vmatprep.mubr.bf16.mxu1 %v1497_v0  ;;  %v1123_v2 = vcombine.high %v79_v1, %v79_v1  ;;  %v1122_v3 = vcombine.low %v79_v1, %v79_v1  ;;  %v1289_v4 = vld [vmem:[%s1676_s0] sm:$0xff]   ;;  %v1125_v6 = vcombine.high %v80_v5, %v80_v5  ;;  %v1124_v7 = vcombine.low %v80_v5, %v80_v5  ;;  %v1292_v8 = vld [vmem:[#allocation2 + $0x4] ss:$8 sps:$4 sm:$0xff]   ;;  %v1294_v9 = vld [vmem:[#allocation2] ss:$8 sps:$4 sm:$0xff]  }
  0x38   :  { %v1295_v11 = vld [vmem:[#allocation2 + $0x14] ss:$8 sps:$4 sm:$0xff]   ;;  %vm96_vm1 = vcmask 64512   ;;  %649 = vmatprep.subr.bf16.mxu0 %v1292_v8  ;;  %v1297_v13 = vld [vmem:[#allocation2 + $0x10] ss:$8 sps:$4 sm:$0xff]   ;;  %v1388_v43 = vld [vmem:[#allocation4 + $0x40] sm:$0xff]  }
  0x39   :  { %1126 = vmatprep.subr.msk.bf16.mxu1 %vm100_vm0, %v1123_v2  ;;  %v102_v10 = vsel %vm100_vm0, %v1122_v3, 0  ;;  %v108_v12 = vsel %vm100_vm0, %v1124_v7, 0  ;;  %650 = vmatpush1.bf16.msra.mxu0 %v1294_v9  ;;  %v1298_v14 = vld [vmem:[#allocation2 + $0x24] ss:$8 sps:$4 sm:$0xff]   ;;  %v1300_v15 = vld [vmem:[#allocation2 + $0x20] ss:$8 sps:$4 sm:$0xff]  }
  0x3a   :  { %114 = vmatpush1.bf16.msra.mxu1 %v102_v10  ;;  %651 = vmatprep.subr.bf16.mxu0 %v1295_v11  ;;  %v1301_v16 = vld [vmem:[#allocation2 + $0x34] ss:$8 sps:$4 sm:$0xff]   ;;  %v1303_v17 = vld [vmem:[#allocation2 + $0x30] ss:$8 sps:$4 sm:$0xff]   ;;  %v1304_v18 = vld [vmem:[#allocation2 + $0x44] ss:$8 sps:$4 sm:$0xff]  }
  0x3b   :  { %1128 = vmatprep.subr.msk.bf16.mxu1 %vm100_vm0, %v1125_v6  ;;  %v1306_v19 = vld [vmem:[#allocation2 + $0x40] ss:$8 sps:$4 sm:$0xff]   ;;  %v1307_v20 = vld [vmem:[#allocation2 + $0x54] ss:$8 sps:$4 sm:$0xff]   ;;  %v1309_v21 = vld [vmem:[#allocation2 + $0x50] ss:$8 sps:$4 sm:$0xff]  }
  0x3c   :  { %v1310_v22 = vld [vmem:[#allocation2 + $0x64] ss:$8 sps:$4 sm:$0xff]   ;;  %v1312_v23 = vld [vmem:[#allocation2 + $0x60] ss:$8 sps:$4 sm:$0xff]   ;;  %v1313_v24 = vld [vmem:[#allocation2 + $0x74] ss:$8 sps:$4 sm:$0xff]  }
  0x3d   :  { %1127 = vmatmul.mubr.msk.bf16.vlgmr.msra.gmra.mrb[0].mxu1 %vm96_vm1, %v1289_v4  ;;  %652 = vmatpush1.bf16.msra.mxu0 %v1297_v13  ;;  %v1315_v25 = vld [vmem:[#allocation2 + $0x70] ss:$8 sps:$4 sm:$0xff]   ;;  %v1316_v26 = vld [vmem:[#allocation2 + $0x84] ss:$8 sps:$4 sm:$0xff]   ;;  %v1318_v27 = vld [vmem:[#allocation2 + $0x80] ss:$8 sps:$4 sm:$0xff]  }
  0x3e   :  { %157 = vmatpush1.bf16.msra.mxu1 %v108_v12  ;;  %188 = vmatprep.mubr.bf16.mxu1 %v1497_v0  ;;  %v1319_v28 = vld [vmem:[#allocation2 + $0x94] ss:$8 sps:$4 sm:$0xff]   ;;  %v1321_v29 = vld [vmem:[#allocation2 + $0x90] ss:$8 sps:$4 sm:$0xff]   ;;  %v1322_v30 = vld [vmem:[#allocation2 + $0xa4] ss:$8 sps:$4 sm:$0xff]  }
  0x3f   :  { %653 = vmatprep.subr.bf16.mxu0 %v1298_v14  ;;  %v1324_v31 = vld [vmem:[#allocation2 + $0xa0] ss:$8 sps:$4 sm:$0xff]   ;;  %v1325_v32 = vld [vmem:[#allocation2 + $0xb4] ss:$8 sps:$4 sm:$0xff]   ;;  %v1327_v33 = vld [vmem:[#allocation2 + $0xb0] ss:$8 sps:$4 sm:$0xff]   ;;  %1221 = vmatprep.subr.bf16.mxu1 %v1388_v43 }
  0x40   :  { %v1328_v34 = vld [vmem:[#allocation2 + $0xc4] ss:$8 sps:$4 sm:$0xff]   ;;  %v1330_v35 = vld [vmem:[#allocation2 + $0xc0] ss:$8 sps:$4 sm:$0xff]   ;;  %v1331_v36 = vld [vmem:[#allocation2 + $0xd4] ss:$8 sps:$4 sm:$0xff]  }
  0x41   :  { %654 = vmatpush1.bf16.msra.mxu0 %v1300_v15  ;;  %v1333_v37 = vld [vmem:[#allocation2 + $0xd0] ss:$8 sps:$4 sm:$0xff]   ;;  %v1334_v38 = vld [vmem:[#allocation2 + $0xe4] ss:$8 sps:$4 sm:$0xff]   ;;  %v1336_v39 = vld [vmem:[#allocation2 + $0xe0] ss:$8 sps:$4 sm:$0xff]  }
  0x42   :  { %655 = vmatprep.subr.bf16.mxu0 %v1301_v16  ;;  %v1337_v40 = vld [vmem:[#allocation2 + $0xf4] ss:$8 sps:$4 sm:$0xff]   ;;  %v1339_v41 = vld [vmem:[#allocation2 + $0xf0] ss:$8 sps:$4 sm:$0xff]   ;;  %v1342_v42 = vld [vmem:[#allocation2 + $0x104] ss:$8 sps:$4 sm:$0xff]  }
  0x43   :  { %v1389_v44 = vld [vmem:[#allocation4] sm:$0xff]   ;;  %v1390_v45 = vld [vmem:[#allocation4 + $0x48] sm:$0xff]   ;;  %v1392_v47 = vld [vmem:[#allocation4 + $0x50] sm:$0xff]   ;;  %v1498_v54 = vmov 1966171168   ;;  %v217_v58 = vshrl.u32 %v216_v56, 7 }
  0x44   :  { %v1391_v46 = vld [vmem:[#allocation4 + $0x8] sm:$0xff]   ;;  %v1393_v48 = vld [vmem:[#allocation4 + $0x10] sm:$0xff]   ;;  %v1394_v49 = vld [vmem:[#allocation4 + $0x58] sm:$0xff]   ;;  %v214_v55 = vunpack.c.l.s4 %v1498_v54  ;;  %vm1500_vm2 = vmmov 0  }
  0x45   :  { %1129 = vmatmul.mubr.msk.bf16.vlgmr.msra.gmra.mrb[4].mxu1 %vm96_vm1, %v1289_v4  ;;  %656 = vmatpush1.bf16.msra.mxu0 %v1303_v17  ;;  %v1395_v50 = vld [vmem:[#allocation4 + $0x18] sm:$0xff]   ;;  %v1396_v51 = vld [vmem:[#allocation4 + $0x60] sm:$0xff]   ;;  %v1398_v53 = vld [vmem:[#allocation4 + $0x68] sm:$0xff]   ;;  %v1626_v2 = vsub.s32 0, %v217_v58 }
  0x46   :  { %657 = vmatprep.subr.bf16.mxu0 %v1304_v18  ;;  %1222 = vmatpush3.bf16.msra.mxu1 %v1389_v44  ;;  %v1397_v52 = vld [vmem:[#allocation4 + $0x20] sm:$0xff]   ;;  %v215_v57 = vunpack.c.0.s8 %v214_v55  ;;  %v1130_v59 = vld.sshfl [vmem:[%s1678_s2] sm:$0x33 pattern:$0x75316420] }
  0x47   :  { %1223 = vmatprep.subr.bf16.mxu1 %v1390_v45  ;;  %v212_v61 = vcombine.high %v1130_v59, %v1130_v59  ;;  %v1340_v17 = vld [vmem:[#allocation2 + $0x100] ss:$8 sps:$4 sm:$0xff]   ;;  %v1369_v44 = vld [vmem:[#allocation2 + $0x194] ss:$8 sps:$4 sm:$0xff]   ;;  %v1367_v45 = vld [vmem:[#allocation2 + $0x190] ss:$8 sps:$4 sm:$0xff]  }
  0x48   :  { %v1618_v60 = vsub.s32 %v215_v57, %v217_v58  ;;  %v1364_v43 = vld [vmem:[#allocation2 + $0x180] ss:$8 sps:$4 sm:$0xff]   ;;  %v1379_v54 = vld [vmem:[#allocation2 + $0x1d0] ss:$8 sps:$4 sm:$0xff]   ;;  %v1384_v56 = vld [vmem:[#allocation2 + $0x1e4] ss:$8 sps:$4 sm:$0xff]  }
  0x49   :  { %658 = vmatpush1.bf16.msra.mxu0 %v1306_v19  ;;  %v1382_v57 = vld [vmem:[#allocation2 + $0x1e0] ss:$8 sps:$4 sm:$0xff]  }
  0x4a   :  { %659 = vmatprep.subr.bf16.mxu0 %v1307_v20  ;;  %1224 = vmatpush3.bf16.msra.mxu1 %v1391_v46  ;;  %v1621_v62 = vrot.slane %v1130_v59, %v1618_v60  ;;  %v226_v63 = vrot.slane %v212_v61, %v1618_v60  ;;  %v1345_v20 = vld [vmem:[#allocation2 + $0x114] ss:$8 sps:$4 sm:$0xff]   ;;  %v1372_v46 = vld [vmem:[#allocation2 + $0x1a4] ss:$8 sps:$4 sm:$0xff]   ;;  %v1385_v61 = vld [vmem:[#allocation2 + $0x1f0] ss:$8 sps:$4 sm:$0xff]  }
  0x4b   :  { %1225 = vmatprep.subr.bf16.mxu1 %v1392_v47  ;;  %v1370_v47 = vld [vmem:[#allocation2 + $0x1a0] ss:$8 sps:$4 sm:$0xff]   ;;  %v1387_v59 = vld [vmem:[#allocation2 + $0x1f4] ss:$8 sps:$4 sm:$0xff]  }
  0x4c   :  { %v230_v1 = vpack.i.b16 %v1621_v62, %v1621_v62  ;;  %v237_v3 = vpack.i.b16 %v226_v63, %v226_v63  ;;  %v228_v9 = vcombine.high %v226_v63, %v226_v63 }
  0x4d   :  { %660 = vmatpush1.bf16.msra.mxu0 %v1309_v21 }
  0x4e   :  { %661 = vmatprep.subr.bf16.mxu0 %v1310_v22  ;;  %1226 = vmatpush3.bf16.msra.mxu1 %v1393_v48  ;;  %v235_v6 = vrot.slane %v230_v1, %v1626_v2  ;;  %v242_v8 = vrot.slane %v237_v3, %v1626_v2  ;;  %v251_v15 = vpack.i.b16 %v228_v9, %v228_v9  ;;  %v1375_v48 = vld [vmem:[#allocation2 + $0x1b4] ss:$8 sps:$4 sm:$0xff]   ;;  %v1399_v1 = vld [vmem:[#allocation4 + $0x28] sm:$0xff]  }
  0x4f   :  { %1227 = vmatprep.subr.bf16.mxu1 %v1394_v49  ;;  %v1373_v49 = vld [vmem:[#allocation2 + $0x1b0] ss:$8 sps:$4 sm:$0xff]  }
  0x50   :  { %v1400_v3 = vld [vmem:[#allocation4 + $0x70] sm:$0xff]  }
  0x51   :  { %662 = vmatpush1.bf16.msra.mxu0 %v1312_v23  ;;  %v256_v23 = vrot.slane %v251_v15, %v1626_v2 }
  0x52   :  { %663 = vmatprep.subr.bf16.mxu0 %v1313_v24  ;;  %1228 = vmatpush3.bf16.msra.mxu1 %v1395_v50  ;;  %v1378_v50 = vld [vmem:[#allocation2 + $0x1c4] ss:$8 sps:$4 sm:$0xff]  }
  0x53   :  { %1229 = vmatprep.subr.bf16.mxu1 %v1396_v51  ;;  %v1376_v51 = vld [vmem:[#allocation2 + $0x1c0] ss:$8 sps:$4 sm:$0xff]  }
  0x55   :  { %664 = vmatpush1.bf16.msra.mxu0 %v1315_v25 }
  0x56   :  { %665 = vmatprep.subr.bf16.mxu0 %v1316_v26  ;;  %1230 = vmatpush3.bf16.msra.mxu1 %v1397_v52  ;;  %v1343_v26 = vld [vmem:[#allocation2 + $0x110] ss:$8 sps:$4 sm:$0xff]   ;;  %v227_v52 = vcombine.high %v1621_v62, %v1621_v62 }
  0x57   :  { %1231 = vmatprep.subr.bf16.mxu1 %v1398_v53  ;;  %v1381_v53 = vld [vmem:[#allocation2 + $0x1d4] ss:$8 sps:$4 sm:$0xff]  }
  0x58   :  { %v244_v55 = vpack.i.b16 %v227_v52, %v227_v52 }
  0x59   :  { %666 = vmatpush1.bf16.msra.mxu0 %v1318_v27 }
  0x5a   :  { %667 = vmatprep.subr.bf16.mxu0 %v1319_v28  ;;  %v1348_v28 = vld [vmem:[#allocation2 + $0x124] ss:$8 sps:$4 sm:$0xff]   ;;  %v249_v58 = vrot.slane %v244_v55, %v1626_v2  ;;  %1232 = vmatpush3.bf16.msra.mxu1 %v1399_v1 }
  0x5b   :  { %1233 = vmatprep.subr.bf16.mxu1 %v1400_v3 }
  0x5d   :  { %668 = vmatpush1.bf16.msra.mxu0 %v1321_v29 }
  0x5e   :  { %669 = vmatprep.subr.bf16.mxu0 %v1322_v30  ;;  %v1346_v30 = vld [vmem:[#allocation2 + $0x120] ss:$8 sps:$4 sm:$0xff]  }
  0x61   :  { %670 = vmatpush1.bf16.msra.mxu0 %v1324_v31 }
  0x62   :  { %671 = vmatprep.subr.bf16.mxu0 %v1325_v32  ;;  %v1351_v32 = vld [vmem:[#allocation2 + $0x134] ss:$8 sps:$4 sm:$0xff]  }
  0x65   :  { %672 = vmatpush1.bf16.msra.mxu0 %v1327_v33  ;;  %v1349_v33 = vld [vmem:[#allocation2 + $0x130] ss:$8 sps:$4 sm:$0xff]  }
  0x66   :  { %673 = vmatprep.subr.bf16.mxu0 %v1328_v34  ;;  %v1354_v34 = vld [vmem:[#allocation2 + $0x144] ss:$8 sps:$4 sm:$0xff]  }
  0x69   :  { %674 = vmatpush1.bf16.msra.mxu0 %v1330_v35  ;;  %v1352_v35 = vld [vmem:[#allocation2 + $0x140] ss:$8 sps:$4 sm:$0xff]  }
  0x6a   :  { %675 = vmatprep.subr.bf16.mxu0 %v1331_v36  ;;  %v1357_v36 = vld [vmem:[#allocation2 + $0x154] ss:$8 sps:$4 sm:$0xff]  }
  0x6d   :  { %676 = vmatpush1.bf16.msra.mxu0 %v1333_v37  ;;  %v1355_v37 = vld [vmem:[#allocation2 + $0x150] ss:$8 sps:$4 sm:$0xff]  }
  0x6e   :  { %677 = vmatprep.subr.bf16.mxu0 %v1334_v38  ;;  %v1360_v38 = vld [vmem:[#allocation2 + $0x164] ss:$8 sps:$4 sm:$0xff]  }
  0x71   :  { %678 = vmatpush1.bf16.msra.mxu0 %v1336_v39  ;;  %v1358_v39 = vld [vmem:[#allocation2 + $0x160] ss:$8 sps:$4 sm:$0xff]  }
  0x72   :  { %679 = vmatprep.subr.bf16.mxu0 %v1337_v40  ;;  %v1363_v40 = vld [vmem:[#allocation2 + $0x174] ss:$8 sps:$4 sm:$0xff]  }
  0x75   :  { %680 = vmatpush1.bf16.msra.mxu0 %v1339_v41  ;;  %v1361_v41 = vld [vmem:[#allocation2 + $0x170] ss:$8 sps:$4 sm:$0xff]  }
  0x76   :  { %692 = vmatprep.subr.bf16.mxu0 %v1342_v42  ;;  %v1366_v42 = vld [vmem:[#allocation2 + $0x184] ss:$8 sps:$4 sm:$0xff]  }
 0x110   :  { %v147_v4 = vpop.f32.mrb[0].mxu1 }
 0x111   :  { %v149_v5 = vpop.f32.mrb[1].mxu1 }
 0x112   :  { %v151_v7 = vpop.f32.mrb[2].mxu1 }
 0x113   :  { %v199_v10 = vpack.c.bf16 %v151_v7, %v147_v4  ;;  %v153_v11 = vpop.f32.mrb[3].mxu1  ;;  %v1401_v4 = vld [vmem:[#allocation4 + $0x30] sm:$0xff]   ;;  %v1499_v7 = vmov 0.0  }
 0x114   :  { %v200_v12 = vpack.c.bf16 %v153_v11, %v149_v5  ;;  %1234 = vmatpush3.bf16.msra.mxu1 %v1401_v4  ;;  %v1402_v5 = vld [vmem:[#allocation4 + $0x78] sm:$0xff]  }
 0x115   :  { %v257_v13 = vadd.bf16 %v235_v6, %v199_v10  ;;  %v1403_v6 = vld [vmem:[#allocation4 + $0x38] sm:$0xff]   ;;  %1235 = vmatprep.subr.bf16.mxu1 %v1402_v5 }
 0x116   :  { %v258_v14 = vadd.bf16 %v242_v8, %v200_v12  ;;  %v1195_v8 = vld.sshfl [vmem:[%s1680_s4] sm:$0x11 pattern:$0x75316420] }
 0x117   :  { %v261_v19 = vmax.bf16 %v1497_v0, %v257_v13  ;;  %v746_v9 = vcombine.high %v1195_v8, %v1195_v8  ;;  %v753_v10 = vrot.slane %v1195_v8, %v1618_v60 }
 0x118   :  { %v262_v16 = vmax.bf16 %v1497_v0, %v258_v14  ;;  %v1631_v18 = vpop.f32.mrb[4].mxu1  ;;  %1236 = vmatpush3.bf16.msra.mxu1 %v1403_v6 }
 0x119   :  { %v192_v21 = vpop.f32.mrb[5].mxu1  ;;  %1252 = vmatprep.subr.bf16.mxu1 %v1499_v7  ;;  %v760_v11 = vrot.slane %v746_v9, %v1618_v60  ;;  %v762_v12 = vpack.i.b16 %v753_v10, %v753_v10  ;;  %v1405_v60 = vld [vmem:[#allocation6 + $0x8] sm:$0xff]  }
 0x11a   :  { %681 = vmatprep.mubr.bf16.mxu0 %v262_v16  ;;  %v1634_v22 = vpop.f32.mrb[6].mxu1 }
 0x11b   :  { %682 = vmatmul.mubr.bf16.vlgmr.msra.gmra.mrb[0].mxu0 %v261_v19  ;;  %v201_v24 = vpack.c.bf16 %v1634_v22, %v1631_v18  ;;  %v196_v25 = vpop.f32.mrb[7].mxu1  ;;  %v769_v13 = vpack.i.b16 %v760_v11, %v760_v11  ;;  %v767_v16 = vrot.slane %v762_v12, %v1626_v2 }
 0x11c   :  { %693 = vmatpush1.bf16.msra.mxu0 %v1340_v17  ;;  %v202_v27 = vpack.c.bf16 %v196_v25, %v192_v21  ;;  %v1404_v25 = vld [vmem:[#allocation6] sm:$0xff]  }
 0x11d   :  { %694 = vmatprep.subr.bf16.mxu0 %v1345_v20  ;;  %v259_v63 = vadd.bf16 %v249_v58, %v201_v24  ;;  %v774_v18 = vrot.slane %v769_v13, %v1626_v2 }
 0x11e   :  { %v260_v29 = vadd.bf16 %v256_v23, %v202_v27  ;;  %v1406_v27 = vld [vmem:[#allocation6 + $0x10] sm:$0xff]  }
 0x11f   :  { %v263_v62 = vmax.bf16 %v1497_v0, %v259_v63 }
 0x120   :  { %695 = vmatpush1.bf16.msra.mxu0 %v1343_v26  ;;  %v264_v31 = vmax.bf16 %v1497_v0, %v260_v29  ;;  %v1408_v29 = vld [vmem:[#allocation6 + $0x20] sm:$0xff]  }
 0x121   :  { %696 = vmatprep.subr.bf16.mxu0 %v1348_v28  ;;  %v1407_v28 = vld [vmem:[#allocation6 + $0x18] sm:$0xff]  }
 0x122   :  { %724 = vmatprep.mubr.bf16.mxu0 %v264_v31  ;;  %v1410_v31 = vld [vmem:[#allocation6 + $0x30] sm:$0xff]  }
 0x124   :  { %697 = vmatpush1.bf16.msra.mxu0 %v1346_v30  ;;  %v1409_v30 = vld [vmem:[#allocation6 + $0x28] sm:$0xff]  }
 0x125   :  { %698 = vmatprep.subr.bf16.mxu0 %v1351_v32  ;;  %v1411_v32 = vld [vmem:[#allocation6 + $0x38] sm:$0xff]  }
 0x128   :  { %699 = vmatpush1.bf16.msra.mxu0 %v1349_v33  ;;  %v949_v33 = vld [vmem:[%s1682_s6] sm:$0x1] }
 0x129   :  { %700 = vmatprep.subr.bf16.mxu0 %v1354_v34 }
 0x12c   :  { %701 = vmatpush1.bf16.msra.mxu0 %v1352_v35  ;;  %v951_v35 = vpack.i.b16 %v949_v33, %v949_v33 }
 0x12d   :  { %702 = vmatprep.subr.bf16.mxu0 %v1357_v36 }
 0x130   :  { %703 = vmatpush1.bf16.msra.mxu0 %v1355_v37 }
 0x131   :  { %704 = vmatprep.subr.bf16.mxu0 %v1360_v38 }
 0x134   :  { %705 = vmatpush1.bf16.msra.mxu0 %v1358_v39 }
 0x135   :  { %706 = vmatprep.subr.bf16.mxu0 %v1363_v40 }
 0x138   :  { %707 = vmatpush1.bf16.msra.mxu0 %v1361_v41  ;;  %v956_v41 = vrot.slane %v951_v35, %v1626_v2 }
 0x139   :  { %708 = vmatprep.subr.bf16.mxu0 %v1366_v42 }
 0x13c   :  { %709 = vmatpush1.bf16.msra.mxu0 %v1364_v43 }
 0x13d   :  { %710 = vmatprep.subr.bf16.mxu0 %v1369_v44 }
 0x140   :  { %711 = vmatpush1.bf16.msra.mxu0 %v1367_v45  ;;  %v1071_v45 = vld [vmem:[%s1685_s9] sm:$0x1] }
 0x141   :  { %712 = vmatprep.subr.bf16.mxu0 %v1372_v46  ;;  %v1212_v46 = vld [vmem:[%s1684_s8] ss:$0 sm:$0xff]  ;;  %vm1104_vm3 = vcmp.lt.f32.partialorder %v1071_v45, -1.0 }
 0x142   :  { %v1105_v5 = vsel %vm1104_vm3, 1, %v1497_v0 }
 0x144   :  { %713 = vmatpush1.bf16.msra.mxu0 %v1370_v47  ;;  %v1076_v47 = vrot.slane %v1071_v45, %v1626_v2 }
 0x145   :  { %714 = vmatprep.subr.bf16.mxu0 %v1375_v48 }
 0x148   :  { %715 = vmatpush1.bf16.msra.mxu0 %v1373_v49 }
 0x149   :  { %716 = vmatprep.subr.bf16.mxu0 %v1378_v50 }
 0x14c   :  { %717 = vmatpush1.bf16.msra.mxu0 %v1376_v51 }
 0x14d   :  { %718 = vmatprep.subr.bf16.mxu0 %v1381_v53 }
 0x150   :  { %719 = vmatpush1.bf16.msra.mxu0 %v1379_v54 }
 0x151   :  { %720 = vmatprep.subr.bf16.mxu0 %v1384_v56 }
 0x154   :  { %721 = vmatpush1.bf16.msra.mxu0 %v1382_v57 }
 0x155   :  { %722 = vmatprep.subr.bf16.mxu0 %v1387_v59 }
 0x158   :  { %723 = vmatpush1.bf16.msra.mxu0 %v1385_v61 }
 0x15b   :  { %725 = vmatmul.mubr.bf16.vlgmr.msra.gmra.mrb[0].mxu0 %v263_v62 }
 0x22e   :  { %v726_v14 = vpop.f32.mrb[0].mxu0 }
 0x22f   :  { %v728_v15 = vpop.f32.mrb[1].mxu0 }
 0x230   :  { %v730_v17 = vpop.f32.mrb[2].mxu0 }
 0x231   :  { %v735_v19 = vpack.c.bf16 %v730_v17, %v726_v14  ;;  %v732_v20 = vpop.f32.mrb[3].mxu0 }
 0x232   :  { %v736_v21 = vpack.c.bf16 %v732_v20, %v728_v15 }
 0x233   :  { %v775_v22 = vadd.bf16 %v767_v16, %v735_v19 }
 0x234   :  { %v776_v23 = vadd.bf16 %v774_v18, %v736_v21 }
 0x235   :  { %v777_v26 = vmax.bf16 %v1497_v0, %v775_v22 }
 0x236   :  { %v778_v24 = vmax.bf16 %v1497_v0, %v776_v23 }
 0x238   :  { %939 = vmatprep.mubr.bf16.mxu1 %v778_v24 }
 0x239   :  { %940 = vmatmul.mubr.bf16.vlgmr.msra.gmra.mrb[8].mxu1 %v777_v26 }
 0x23a   :  { %1253 = vmatpush3.bf16.msra.mxu1 %v1404_v25  ;;  %1268 = vmatprep.mubr.msk.bf16.mxu1 %vm1500_vm2, %v1499_v7 }
 0x23b   :  { %1254 = vmatprep.subr.bf16.mxu1 %v1499_v7 }
 0x23e   :  { %1255 = vmatpush3.bf16.msra.mxu1 %v1405_v60 }
 0x23f   :  { %1256 = vmatprep.subr.bf16.mxu1 %v1499_v7 }
 0x242   :  { %1257 = vmatpush3.bf16.msra.mxu1 %v1406_v27 }
 0x243   :  { %1258 = vmatprep.subr.bf16.mxu1 %v1499_v7 }
 0x246   :  { %1259 = vmatpush3.bf16.msra.mxu1 %v1407_v28 }
 0x247   :  { %1260 = vmatprep.subr.bf16.mxu1 %v1499_v7 }
 0x24a   :  { %1261 = vmatpush3.bf16.msra.mxu1 %v1408_v29 }
 0x24b   :  { %1262 = vmatprep.subr.bf16.mxu1 %v1499_v7 }
 0x24e   :  { %1263 = vmatpush3.bf16.msra.mxu1 %v1409_v30 }
 0x24f   :  { %1264 = vmatprep.subr.bf16.mxu1 %v1499_v7 }
 0x252   :  { %1265 = vmatpush3.bf16.msra.mxu1 %v1410_v31 }
 0x253   :  { %1266 = vmatprep.subr.bf16.mxu1 %v1499_v7  ;;  %v1109_v7 = vrot.slane %v1105_v5, %v1626_v2 }
 0x255   :  { %vm1110_vm4 = vcmp.eq.s32.totalorder %v1109_v7, 1 }
 0x256   :  { %1267 = vmatpush3.bf16.msra.mxu1 %v1411_v32 }
 0x30c   :  { %v1237_v34 = vpop.f32.mrb[8].mxu1 }
 0x30d   :  { %v1238_v36 = vpop.f32.mrb[9].mxu1 }
 0x30e   :  { %v1239_v37 = vadd.f32 %v1238_v36, %v1237_v34  ;;  %v1240_v38 = vpop.f32.mrb[10].mxu1 }
 0x30f   :  { %v1241_v39 = vpop.f32.mrb[11].mxu1 }
 0x310   :  { %v1242_v40 = vadd.f32 %v1241_v39, %v1240_v38 }
 0x312   :  { %v948_v42 = vpack.c.bf16 %v1242_v40, %v1239_v37 }
 0x314   :  { %v957_v43 = vadd.bf16 %v956_v41, %v948_v42 }
 0x316   :  { %v958_v44 = vmax.bf16 %v1497_v0, %v957_v43 }
 0x318   :  { %1269 = vmatmul.mubr.bf16.vlgmr.msra.gmra.mrb[12].mxu1 %v958_v44 }
 0x3eb   :  { %v1064_v48 = vpop.f32.mrb[12].mxu1 }
 0x3ec   :  { %v1065_v49 = vadd.f32 %v1212_v46, %v1064_v48  ;;  %v1270_v50 = vpop.f32.mrb[13].mxu1 }
 0x3ed   :  { %v1067_v51 = vpop.f32.mrb[14].mxu1 }
 0x3ee   :  { %v1068_v52 = vadd.f32 %v1212_v46, %v1067_v51  ;;  %v1271_v53 = vpop.f32.mrb[15].mxu1  ;;  %v1078_v54 = vadd.f32 %v1076_v47, %v1065_v49 }
 0x3f0   :  { %1080 = vmax.xlane.f32.xlu0 %v1078_v54  ;;  %v1079_v55 = vadd.f32 %v1076_v47, %v1068_v52 }
 0x3f4   :  { %1082 = vmax.xlane.f32.xlu0 %v1079_v55 }
 0x47d   :  { %v1081_v56 = vpop.xlane.xlu0 %1080 }
 0x47e   :  { %v1084_v57 = vsub.f32 %v1078_v54, %v1081_v56 }
 0x480   :  { %v1086_v58 = vmul.f32 1.442695, %v1084_v57 }
 0x481   :  { %v1083_v59 = vpop.xlane.xlu0 %1082 }
 0x482   :  { %1412 = vpow2.f32 %v1086_v58  ;;  %v1085_v61 = vsub.f32 %v1079_v55, %v1083_v59 }
 0x484   :  { %v1088_v63 = vmul.f32 1.442695, %v1085_v61 }
 0x486   :  { %1414 = vpow2.f32 %v1088_v63 }
 0x48c   :  { %v1413_v62 = vpop.eup %1412 }
 0x48d   :  { %1090 = vadd.xlane.f32.xlu1 %v1413_v62 }
 0x490   :  { %v1415_v1 = vpop.eup %1414 }
 0x491   :  { %1092 = vadd.xlane.f32.xlu1 %v1415_v1 }
 0x51a   :  { %v1091_v3 = vpop.xlane.xlu1 %1090 }
 0x51b   :  { %1416 = vrcp.f32 %v1091_v3 }
 0x51e   :  { %v1093_v4 = vpop.xlane.xlu1 %1092 }
 0x51f   :  { %1418 = vrcp.f32 %v1093_v4 }
 0x525   :  { %v1417_v6 = vpop.eup %1416 }
 0x526   :  { %v1098_v8 = vmul.f32 %v1417_v6, %v1413_v62 }
 0x528   :  { %v1100_v9 = vmax.f32 %v1098_v8, 1e-08 }
 0x529   :  { %v1419_v10 = vpop.eup %1418 }
 0x52a   :  { %v1102_v11 = vmin.f32 %v1100_v9, 1.0  ;;  %v1099_v12 = vmul.f32 %v1419_v10, %v1415_v1 }
 0x52c   :  { %v1111_v13 = vsel %vm1110_vm4, %v1065_v49, %v1102_v11  ;;  %v1101_v14 = vmax.f32 %v1099_v12, 1e-08 }
 0x52d   :  { %1113 = vst [vmem:[%s1686_s10] sm:$0xff] %v1111_v13 }
 0x52e   :  { %v1103_v15 = vmin.f32 %v1101_v14, 1.0 }
 0x530   :  { %v1112_v16 = vsel %vm1110_vm4, %v1068_v52, %v1103_v15 }
 0x531   :  { %1114 = vst [vmem:[%s1686_s10 + $0x8] sm:$0xff] %v1112_v16 }
 0x532   :  { %1119 = vsyncpa [#allocation3], 1 }
 0x533   :  { %1120 = vsyncpa [#allocation5], 1 }

</bundles_post_ra>
